<compile_context>
chip_gen: v6e
topology: v6e:2x2x1
jax: 0.10.0
libtpu: 0.0.40
codegen_flags: <defaults>
</compile_context>

<pallas_src>
import functools

import jax
import jax.numpy as jnp
from jax.experimental import pallas as pl
from jax.experimental.pallas import tpu as pltpu


def _simple_mlp_kernel(two_din,
                       x_ref, h_ref,
                       W1x_ref, Whp_ref, b1h_ref,
                       Wf_ref, bf_ref,
                       out_ref, hnew_ref):
    x = x_ref[...]            # (TM, Din)
    h = h_ref[...]            # (TM, H)

    # Stage 1 (fused, lane-dense 2*Din+H wide): [ x@W1 + b1 | x@Wx + h@Wh + bx+bh ]
    stage1 = (jnp.dot(x, W1x_ref[...], preferred_element_type=jnp.float32)
              + jnp.dot(h, Whp_ref[...], preferred_element_type=jnp.float32)
              + b1h_ref[...])

    # ReLU only on the graph_conv.l1 lanes (first 2*Din); h_new lanes pass through.
    # TODO(synk): nn.Dropout(p=0.2) after this ReLU omitted (eval / inference mode).
    lane = jax.lax.broadcasted_iota(jnp.int32, stage1.shape, dimension=1)
    combined = jnp.where(lane < two_din, jnp.maximum(stage1, 0.0), stage1)

    h_new = stage1[:, two_din:]                                  # (TM, H)

    # Stage 2 (out_proj with graph_conv.l2 folded in):
    #   out = relu( relu(z1) @ (W2@Wox) + h_new @ Woh + (b2@Wox + bo) )
    out = (jnp.dot(combined, Wf_ref[...], preferred_element_type=jnp.float32)
           + bf_ref[...])
    out_ref[...] = jnp.maximum(out, 0.0)                         # act_func = ReLU
    hnew_ref[...] = h_new


def _row_tile(m, max_tile=2048):
    """Row tile: full-extent block for small M, else the largest divisor of M that is a
    multiple of 8 (f32 sublane) and <= max_tile."""
    if m <= max_tile or m % 8 != 0:
        return m
    tm = max_tile - (max_tile % 8)
    while tm >= 8:
        if m % tm == 0:
            return tm
        tm -= 8
    return m


def simple_mlp_forward(x, adj, h, params):
    del adj  # argument of SimpleMLPModel.forward but never used by it -> never DMA'd
    B, N, Din = x.shape
    H = h.shape[-1]
    Dout = params["bf"].shape[-1]
    two_din = 2 * Din
    M = B * N

    x2 = x.reshape(M, Din)        # contiguous reshape: no copy
    h2 = h.reshape(M, H)

    tm = _row_tile(M)
    grid = (M // tm,)

    kernel = functools.partial(_simple_mlp_kernel, two_din)

    def resident(shape):
        # Constant index_map: Pallas fetches the weight once and keeps it in VMEM.
        return pl.BlockSpec(shape, lambda i: (0, 0))

    in_specs = [
        pl.BlockSpec((tm, Din), lambda i: (i, 0)),   # x rows
        pl.BlockSpec((tm, H), lambda i: (i, 0)),     # h rows
        resident(params["W1x"].shape),               # (Din, 2Din+H)
        resident(params["Whp"].shape),               # (H,   2Din+H)
        resident(params["b1h"].shape),               # (1,   2Din+H)
        resident(params["Wf"].shape),                # (2Din+H, Dout)
        resident(params["bf"].shape),                # (1, Dout)
    ]

    out, h_new = pl.pallas_call(
        kernel,
        out_shape=(jax.ShapeDtypeStruct((M, Dout), jnp.float32),
                   jax.ShapeDtypeStruct((M, H), jnp.float32)),
        grid_spec=pltpu.PrefetchScalarGridSpec(
            num_scalar_prefetch=0,
            grid=grid,
            in_specs=in_specs,
            out_specs=[pl.BlockSpec((tm, Dout), lambda i: (i, 0)),
                       pl.BlockSpec((tm, H), lambda i: (i, 0))],
        ),
        compiler_params=pltpu.CompilerParams(
            dimension_semantics=("parallel",),
            # Safe on every generation (v5e scoped default 16 MiB, v7x physical 64 MiB),
            # and lets the larger row tiles through.
            vmem_limit_bytes=32 * 1024 * 1024),
    )(x2, h2, params["W1x"], params["Whp"], params["b1h"],
      params["Wf"], params["bf"])

    return out.reshape(B, N, Dout), h_new.reshape(B, N, H)


def init_params(key, Din, H, Dout):
    """Deterministic synthetic params in PyTorch layout (nn.Linear W is (out,in); y = x@W.T + b)."""
    ks = jax.random.split(key, 10)
    sc = 0.1
    W1 = jax.random.normal(ks[0], (2 * Din, Din), jnp.float32) * sc    # graph_conv.l1
    b1 = jax.random.normal(ks[1], (2 * Din,), jnp.float32) * sc
    W2 = jax.random.normal(ks[2], (H, 2 * Din), jnp.float32) * sc      # graph_conv.l2
    b2 = jax.random.normal(ks[3], (H,), jnp.float32) * sc
    Wx = jax.random.normal(ks[4], (H, Din), jnp.float32) * sc          # temporal.x_proj
    bx = jax.random.normal(ks[5], (H,), jnp.float32) * sc
    Wh = jax.random.normal(ks[6], (H, H), jnp.float32) * sc            # temporal.h_proj
    bh = jax.random.normal(ks[7], (H,), jnp.float32) * sc
    Wo = jax.random.normal(ks[8], (Dout, 2 * H), jnp.float32) * sc     # temporal.out_proj
    bo = jax.random.normal(ks[9], (Dout,), jnp.float32) * sc
    return dict(W1=W1, b1=b1, W2=W2, b2=b2, Wx=Wx, bx=bx, Wh=Wh, bh=bh, Wo=Wo, bo=bo)


def prep_kernel_params(p):
    """Repack / fuse PyTorch-layout params into the lane-dense operands the kernel uses."""
    W1m = p["W1"].T          # (Din, 2Din)
    W2m = p["W2"].T          # (2Din, H)
    Wxm = p["Wx"].T          # (Din, H)
    Whm = p["Wh"].T          # (H, H)
    Wom = p["Wo"].T          # (2H, Dout)
    H = Whm.shape[0]
    two_din = W1m.shape[1]

    Wox = Wom[:H]            # half of out_proj acting on x_hidden
    Woh = Wom[H:]            # half of out_proj acting on h_new

    W1x = jnp.concatenate([W1m, Wxm], axis=1)                              # (Din, 2Din+H)
    Whp = jnp.concatenate([jnp.zeros((H, two_din), jnp.float32), Whm], axis=1)
    b1h = jnp.concatenate([p["b1"], p["bx"] + p["bh"]]).reshape(1, -1)     # (1, 2Din+H)

    # No nonlinearity between graph_conv.l2 and out_proj, so fold them (exact in real
    # arithmetic):  x_hidden @ Wox = relu(z1) @ (W2 @ Wox) + b2 @ Wox
    W2ox = jnp.dot(W2m, Wox, precision=jax.lax.Precision.HIGHEST)          # (2Din, Dout)
    Wf = jnp.concatenate([W2ox, Woh], axis=0)                              # (2Din+H, Dout)
    bf = (jnp.dot(p["b2"], Wox, precision=jax.lax.Precision.HIGHEST)
          + p["bo"]).reshape(1, -1)                                        # (1, Dout)

    return dict(W1x=W1x, Whp=Whp, b1h=b1h, Wf=Wf, bf=bf)


def reference_forward(x, adj, h, p):
    """Pure-JAX reference mirroring the PyTorch forward (eval mode), unfused."""
    del adj
    z1 = jax.nn.relu(x @ p["W1"].T + p["b1"])
    x_hidden = z1 @ p["W2"].T + p["b2"]
    h_new = (x @ p["Wx"].T + p["bx"]) + (h @ p["Wh"].T + p["bh"])
    total = jnp.concatenate([x_hidden, h_new], axis=-1)
    out = jax.nn.relu(total @ p["Wo"].T + p["bo"])
    return out, h_new


if __name__ == "__main__":
    # Small shapes; 2*Din + H = 128 and Dout = H = 64 keep every kernel stream lane-aligned.
    # M = B*N = 128 <= 2048 -> single full-extent block (grid=(1,)), no per-step overhead.
    B, N, Din, H, Dout = 2, 64, 32, 64, 64

    key = jax.random.PRNGKey(0)
    kx, kadj, kh, kp = jax.random.split(key, 4)

    x = jax.random.normal(kx, (B, N, Din), jnp.float32)
    adj = (jax.random.uniform(kadj, (B, N, N)) > 0.5).astype(jnp.float32)  # unused by forward
    h = jax.random.normal(kh, (B, N, H), jnp.float32) * 0.5

    torch_params = init_params(kp, Din, H, Dout)
    kernel_params = prep_kernel_params(torch_params)

    out, h_new = simple_mlp_forward(x, adj, h, kernel_params)
    jax.block_until_ready((out, h_new))

    ref_out, ref_h = reference_forward(x, adj, h, torch_params)
    assert jnp.allclose(out, ref_out, atol=1e-4, rtol=1e-4), \
        float(jnp.max(jnp.abs(out - ref_out)))
    assert jnp.allclose(h_new, ref_h, atol=1e-4, rtol=1e-4), \
        float(jnp.max(jnp.abs(h_new - ref_h)))

    print("KERNEL_OK")
</pallas_src>

<mosaic_0001>
module attributes {stable_mosaic.version = 11 : i64} {
  func.func @_simple_mlp_kernel(%arg0: i32, %arg1: memref<128x32xf32, #tpu.memory_space<vmem>>, %arg2: memref<128x64xf32, #tpu.memory_space<vmem>>, %arg3: memref<32x128xf32, #tpu.memory_space<vmem>>, %arg4: memref<64x128xf32, #tpu.memory_space<vmem>>, %arg5: memref<1x128xf32, #tpu.memory_space<vmem>>, %arg6: memref<128x64xf32, #tpu.memory_space<vmem>>, %arg7: memref<1x64xf32, #tpu.memory_space<vmem>>, %arg8: memref<128x64xf32, #tpu.memory_space<vmem>>, %arg9: memref<128x64xf32, #tpu.memory_space<vmem>>) attributes {dimension_semantics = [#tpu.dimension_semantics<parallel>], iteration_bounds = array<i64: 1>, scalar_prefetch = 0 : i64, scratch_operands = 0 : i64, tpu.core_type = #tpu.core_type<tc>, window_params = [{transform_indices = @transform_0, window_bounds = array<i64: 128, 32>}, {transform_indices = @transform_1, window_bounds = array<i64: 128, 64>}, {pipeline_mode = #tpu.pipeline_mode<synchronous>, transform_indices = @transform_2, window_bounds = array<i64: 32, 128>}, {pipeline_mode = #tpu.pipeline_mode<synchronous>, transform_indices = @transform_3, window_bounds = array<i64: 64, 128>}, {pipeline_mode = #tpu.pipeline_mode<synchronous>, transform_indices = @transform_4, window_bounds = array<i64: 1, 128>}, {pipeline_mode = #tpu.pipeline_mode<synchronous>, transform_indices = @transform_5, window_bounds = array<i64: 128, 64>}, {pipeline_mode = #tpu.pipeline_mode<synchronous>, transform_indices = @transform_6, window_bounds = array<i64: 1, 64>}, {transform_indices = @transform_7, window_bounds = array<i64: 128, 64>}, {transform_indices = @transform_8, window_bounds = array<i64: 128, 64>}]} {
    %c0 = arith.constant 0 : index
    %c0_0 = arith.constant 0 : index
    %0 = vector.load %arg1[%c0, %c0_0] : memref<128x32xf32, #tpu.memory_space<vmem>>, vector<128x32xf32>
    %c0_1 = arith.constant 0 : index
    %c0_2 = arith.constant 0 : index
    %1 = vector.load %arg2[%c0_1, %c0_2] : memref<128x64xf32, #tpu.memory_space<vmem>>, vector<128x64xf32>
    %c0_3 = arith.constant 0 : index
    %c0_4 = arith.constant 0 : index
    %2 = vector.load %arg3[%c0_3, %c0_4] : memref<32x128xf32, #tpu.memory_space<vmem>>, vector<32x128xf32>
    %cst = arith.constant dense<0.000000e+00> : vector<128x128xf32>
    %3 = tpu.matmul %0, %2, %cst {dimension_numbers = #tpu.dot_dimension_numbers<[1], [0], [0], [1], [0, 0, 1, 1], [], []>} : vector<128x32xf32>, vector<32x128xf32>, vector<128x128xf32> -> vector<128x128xf32>
    %c0_5 = arith.constant 0 : index
    %c0_6 = arith.constant 0 : index
    %4 = vector.load %arg4[%c0_5, %c0_6] : memref<64x128xf32, #tpu.memory_space<vmem>>, vector<64x128xf32>
    %cst_7 = arith.constant dense<0.000000e+00> : vector<128x128xf32>
    %5 = tpu.matmul %1, %4, %cst_7 {dimension_numbers = #tpu.dot_dimension_numbers<[1], [0], [0], [1], [0, 0, 1, 1], [], []>} : vector<128x64xf32>, vector<64x128xf32>, vector<128x128xf32> -> vector<128x128xf32>
    %6 = arith.addf %3, %5 : vector<128x128xf32>
    %c0_8 = arith.constant 0 : index
    %c0_9 = arith.constant 0 : index
    %7 = vector.load %arg5[%c0_8, %c0_9] : memref<1x128xf32, #tpu.memory_space<vmem>>, vector<1x128xf32>
    %8 = vector.broadcast %7 : vector<1x128xf32> to vector<128x128xf32>
    %9 = arith.addf %6, %8 : vector<128x128xf32>
    %10 = tpu.iota {dimensions = array<i32: 1>} : vector<128x128xi32>
    %c64_i32 = arith.constant 64 : i32
    %11 = vector.broadcast %c64_i32 : i32 to vector<128x128xi32>
    %12 = arith.cmpi slt, %10, %11 : vector<128x128xi32>
    %cst_10 = arith.constant 0.000000e+00 : f32
    %13 = vector.broadcast %cst_10 : f32 to vector<128x128xf32>
    %14 = arith.maximumf %9, %13 : vector<128x128xf32>
    %15 = arith.select %12, %14, %9 : vector<128x128xi1>, vector<128x128xf32>
    %16 = vector.extract_strided_slice %9 {offsets = [0, 64], sizes = [128, 64], strides = [1, 1]} : vector<128x128xf32> to vector<128x64xf32>
    %c0_11 = arith.constant 0 : index
    %c0_12 = arith.constant 0 : index
    %17 = vector.load %arg6[%c0_11, %c0_12] : memref<128x64xf32, #tpu.memory_space<vmem>>, vector<128x64xf32>
    %cst_13 = arith.constant dense<0.000000e+00> : vector<128x64xf32>
    %18 = tpu.matmul %15, %17, %cst_13 {dimension_numbers = #tpu.dot_dimension_numbers<[1], [0], [0], [1], [0, 0, 1, 1], [], []>} : vector<128x128xf32>, vector<128x64xf32>, vector<128x64xf32> -> vector<128x64xf32>
    %c0_14 = arith.constant 0 : index
    %c0_15 = arith.constant 0 : index
    %19 = vector.load %arg7[%c0_14, %c0_15] : memref<1x64xf32, #tpu.memory_space<vmem>>, vector<1x64xf32>
    %20 = vector.broadcast %19 : vector<1x64xf32> to vector<128x64xf32>
    %21 = arith.addf %18, %20 : vector<128x64xf32>
    %cst_16 = arith.constant 0.000000e+00 : f32
    %22 = vector.broadcast %cst_16 : f32 to vector<128x64xf32>
    %23 = arith.maximumf %21, %22 : vector<128x64xf32>
    %c0_17 = arith.constant 0 : index
    %c0_18 = arith.constant 0 : index
    %24 = vector.load %arg8[%c0_17, %c0_18] : memref<128x64xf32, #tpu.memory_space<vmem>>, vector<128x64xf32>
    tpu.vector_store %arg8[%c0_17, %c0_18], %23 {strides = array<i32>} : memref<128x64xf32, #tpu.memory_space<vmem>>, vector<128x64xf32>,
    %c0_19 = arith.constant 0 : index
    %c0_20 = arith.constant 0 : index
    %25 = vector.load %arg9[%c0_19, %c0_20] : memref<128x64xf32, #tpu.memory_space<vmem>>, vector<128x64xf32>
    tpu.vector_store %arg9[%c0_19, %c0_20], %16 {strides = array<i32>} : memref<128x64xf32, #tpu.memory_space<vmem>>, vector<128x64xf32>,
    return
  }
  func.func @transform_0(%arg0: i32) -> (i32, i32) {
    %c0_i32 = arith.constant 0 : i32
    %c0_i32_0 = arith.constant 0 : i32
    return %arg0, %c0_i32 : i32, i32
  }
  func.func @transform_1(%arg0: i32) -> (i32, i32) {
    %c0_i32 = arith.constant 0 : i32
    %c0_i32_0 = arith.constant 0 : i32
    return %arg0, %c0_i32 : i32, i32
  }
  func.func @transform_2(%arg0: i32) -> (i32, i32) {
    %c0_i32 = arith.constant 0 : i32
    %c0_i32_0 = arith.constant 0 : i32
    %c0_i32_1 = arith.constant 0 : i32
    return %c0_i32, %c0_i32_0 : i32, i32
  }
  func.func @transform_3(%arg0: i32) -> (i32, i32) {
    %c0_i32 = arith.constant 0 : i32
    %c0_i32_0 = arith.constant 0 : i32
    %c0_i32_1 = arith.constant 0 : i32
    return %c0_i32, %c0_i32_0 : i32, i32
  }
  func.func @transform_4(%arg0: i32) -> (i32, i32) {
    %c0_i32 = arith.constant 0 : i32
    %c0_i32_0 = arith.constant 0 : i32
    %c0_i32_1 = arith.constant 0 : i32
    return %c0_i32, %c0_i32_0 : i32, i32
  }
  func.func @transform_5(%arg0: i32) -> (i32, i32) {
    %c0_i32 = arith.constant 0 : i32
    %c0_i32_0 = arith.constant 0 : i32
    %c0_i32_1 = arith.constant 0 : i32
    return %c0_i32, %c0_i32_0 : i32, i32
  }
  func.func @transform_6(%arg0: i32) -> (i32, i32) {
    %c0_i32 = arith.constant 0 : i32
    %c0_i32_0 = arith.constant 0 : i32
    %c0_i32_1 = arith.constant 0 : i32
    return %c0_i32, %c0_i32_0 : i32, i32
  }
  func.func @transform_7(%arg0: i32) -> (i32, i32) {
    %c0_i32 = arith.constant 0 : i32
    %c0_i32_0 = arith.constant 0 : i32
    return %arg0, %c0_i32 : i32, i32
  }
  func.func @transform_8(%arg0: i32) -> (i32, i32) {
    %c0_i32 = arith.constant 0 : i32
    %c0_i32_0 = arith.constant 0 : i32
    return %arg0, %c0_i32 : i32, i32
  }
}

</mosaic_0001>

<bundles_post_ra>
// kernel: tpu_custom_call.1
= control target key start
LH: loop header
LB: loop body
LE: loop exit
PB: predicated region body
PF: predicated region fallthrough
CT: control target
= control target key end

     0   :  { %vm266_vm0 = vcmask 261120   ;;  %vm72_vm1 = vcmask 523264   ;;  %v483_v63 = vlaneseq  ;;  %s1550_s3 = inlined_call_operand.vmem [shape: f32[64,128], index: 3, kind: input, shape index: {}]   ;;  %s1551_s2 = inlined_call_operand.vmem [shape: f32[32,128], index: 2, kind: input, shape index: {}]   ;;  %s1552_s0 = inlined_call_operand.vmem [shape: f32[128,32], index: 0, kind: input, shape index: {}]   ;;  %s1553_s1 = inlined_call_operand.vmem [shape: f32[128,64], index: 1, kind: input, shape index: {}]   ;;  %s1554_s5 = inlined_call_operand.vmem [shape: f32[128,64], index: 5, kind: input, shape index: {}]   ;;  %s1555_s4 = inlined_call_operand.vmem [shape: f32[1,128], index: 4, kind: input, shape index: {}]   ;;  %s1556_s8 = inlined_call_operand.vmem [shape: f32[128,64], index: 8, kind: output, shape index: {1}]   ;;  %s1557_s6 = inlined_call_operand.vmem [shape: f32[1,64], index: 6, kind: input, shape index: {}]   ;;  %s1558_s7 = inlined_call_operand.vmem [shape: f32[128,64], index: 7, kind: output, shape index: {0}]  }
   0x1   :  { %v71_v0 = vld [vmem:[%s1550_s3 + $0x38] sm:$0xff]  ;;  %v70_v1 = vld [vmem:[%s1550_s3 + $0x30] sm:$0xff]  ;;  %v69_v3 = vld [vmem:[%s1550_s3 + $0x28] sm:$0xff] }
   0x2   :  { %916 = vmatprep.subr.mxu0 %v71_v0  ;;  %v63_v2 = vld [vmem:[%s1551_s2 + $0x18] sm:$0xff]  ;;  %v62_v4 = vld [vmem:[%s1551_s2 + $0x10] sm:$0xff]  ;;  %v61_v5 = vld [vmem:[%s1551_s2 + $0x8] sm:$0xff] }
   0x3   :  { %917 = vmatpush3.msra.mxu0 %v71_v0  ;;  %956 = vmatprep.subr.mxu1 %v63_v2  ;;  %v68_v6 = vld [vmem:[%s1550_s3 + $0x20] sm:$0xff]  ;;  %v67_v8 = vld [vmem:[%s1550_s3 + $0x18] sm:$0xff]  ;;  %v66_v10 = vld [vmem:[%s1550_s3 + $0x10] sm:$0xff] }
   0x4   :  { %918 = vmatprep.subr.mxu0 %v70_v1  ;;  %957 = vmatpush3.msra.mxu1 %v63_v2  ;;  %v60_v7 = vld [vmem:[%s1551_s2] sm:$0xff]  ;;  %v29_v11 = vld [vmem:[%s1552_s0 + $0x8] sm:$0xff]  ;;  %v30_v14 = vld [vmem:[%s1552_s0 + $0x10] sm:$0xff] }
   0x5   :  { %919 = vmatpush3.msra.mxu0 %v70_v1  ;;  %958 = vmatprep.subr.mxu1 %v62_v4  ;;  %v28_v9 = vld [vmem:[%s1552_s0] sm:$0xff]  ;;  %v65_v13 = vld [vmem:[%s1550_s3 + $0x8] sm:$0xff]  ;;  %v31_v16 = vld [vmem:[%s1552_s0 + $0x18] sm:$0xff] }
   0x6   :  { %920 = vmatprep.subr.mxu0 %v69_v3  ;;  %959 = vmatpush3.msra.mxu1 %v62_v4  ;;  %v44_v12 = vld [vmem:[%s1553_s1] sm:$0xff]  ;;  %v45_v18 = vld [vmem:[%s1553_s1 + $0x8] sm:$0xff]  ;;  %v533_v19 = vld [vmem:[%s1554_s5 + $0x78] sm:$0xff] }
   0x7   :  { %921 = vmatpush3.msra.mxu0 %v69_v3  ;;  %960 = vmatprep.subr.mxu1 %v61_v5  ;;  %v64_v15 = vld [vmem:[%s1550_s3] sm:$0xff]  ;;  %v46_v20 = vld [vmem:[%s1553_s1 + $0x10] sm:$0xff]  ;;  %v33_v21 = vld [vmem:[%s1552_s0 + $0x28] sm:$0xff] }
   0x8   :  { %922 = vmatprep.subr.mxu0 %v68_v6  ;;  %961 = vmatpush3.msra.mxu1 %v61_v5  ;;  %v32_v17 = vld [vmem:[%s1552_s0 + $0x20] sm:$0xff]  ;;  %v532_v22 = vld [vmem:[%s1554_s5 + $0x70] sm:$0xff]  ;;  %v47_v24 = vld [vmem:[%s1553_s1 + $0x18] sm:$0xff] }
   0x9   :  { %923 = vmatpush3.msra.mxu0 %v68_v6  ;;  %962 = vmatprep.subr.mxu1 %v60_v7  ;;  %v34_v23 = vld [vmem:[%s1552_s0 + $0x30] sm:$0xff]  ;;  %v531_v25 = vld [vmem:[%s1554_s5 + $0x68] sm:$0xff]  ;;  %v48_v26 = vld [vmem:[%s1553_s1 + $0x20] sm:$0xff] }
   0xa   :  { %924 = vmatprep.subr.mxu0 %v67_v8  ;;  %963 = vmatpush3.msra.mxu1 %v60_v7  ;;  %v35_v27 = vld [vmem:[%s1552_s0 + $0x38] sm:$0xff]  ;;  %v1220_v28 = vld [vmem:[%s1554_s5 + $0x60] sm:$0xff]  ;;  %v49_v30 = vld [vmem:[%s1553_s1 + $0x28] sm:$0xff] }
   0xb   :  { %925 = vmatpush3.msra.mxu0 %v67_v8  ;;  %964 = vmatprep.mubr.msk.f32.mxu1 %vm266_vm0, %v28_v9  ;;  %v36_v29 = vld [vmem:[%s1552_s0 + $0x40] sm:$0xff]  ;;  %v1233_v31 = vld [vmem:[%s1554_s5 + $0x58] sm:$0xff]  ;;  %v50_v32 = vld [vmem:[%s1553_s1 + $0x30] sm:$0xff]  ;;  %v1353_v8 = vand.u32 127, %v483_v63 }
   0xc   :  { %926 = vmatprep.subr.mxu0 %v66_v10  ;;  %965 = vmatmul.mubr.msk.f32.vlgmr.msra.gmra.mxu1 %vm266_vm0, %v29_v11  ;;  %v37_v33 = vld [vmem:[%s1552_s0 + $0x48] sm:$0xff]  ;;  %v528_v34 = vld [vmem:[%s1554_s5 + $0x50] sm:$0xff]  ;;  %v51_v36 = vld [vmem:[%s1553_s1 + $0x38] sm:$0xff] }
   0xd   :  { %927 = vmatpush3.msra.mxu0 %v66_v10  ;;  %932 = vmatprep.mubr.msk.f32.mxu0 %vm72_vm1, %v44_v12  ;;  %v38_v35 = vld [vmem:[%s1552_s0 + $0x50] sm:$0xff]  ;;  %v52_v37 = vld [vmem:[%s1553_s1 + $0x40] sm:$0xff]  ;;  %v39_v38 = vld [vmem:[%s1552_s0 + $0x58] sm:$0xff]  ;;  %vm485_vm2 = vcmp.lt.s32.totalorder %v1353_v8, 64 }
   0xe   :  { %928 = vmatprep.subr.mxu0 %v65_v13  ;;  %967 = vmatprep.mubr.msk.f32.mxu1 %vm266_vm0, %v30_v14  ;;  %v527_v39 = vld [vmem:[%s1554_s5 + $0x48] sm:$0xff]  ;;  %v40_v40 = vld [vmem:[%s1552_s0 + $0x60] sm:$0xff]  ;;  %v54_v42 = vld [vmem:[%s1553_s1 + $0x50] sm:$0xff] }
   0xf   :  { %929 = vmatpush3.msra.mxu0 %v65_v13  ;;  %1044 = vmatprep.subr.mxu1 %v533_v19  ;;  %v53_v41 = vld [vmem:[%s1553_s1 + $0x48] sm:$0xff]  ;;  %v526_v44 = vld [vmem:[%s1554_s5 + $0x40] sm:$0xff]  ;;  %v42_v45 = vld [vmem:[%s1552_s0 + $0x70] sm:$0xff] }
  0x10   :  { %930 = vmatprep.subr.mxu0 %v64_v15  ;;  %968 = vmatmul.mubr.msk.f32.gmra.mxu1 %vm266_vm0, %v31_v16  ;;  %v41_v43 = vld [vmem:[%s1552_s0 + $0x68] sm:$0xff]  ;;  %v55_v46 = vld [vmem:[%s1553_s1 + $0x58] sm:$0xff]  ;;  %v56_v47 = vld [vmem:[%s1553_s1 + $0x60] sm:$0xff] }
  0x11   :  { %931 = vmatpush3.msra.mxu0 %v64_v15  ;;  %970 = vmatprep.mubr.msk.f32.mxu1 %vm266_vm0, %v32_v17  ;;  %v43_v48 = vld [vmem:[%s1552_s0 + $0x78] sm:$0xff]  ;;  %v57_v50 = vld [vmem:[%s1553_s1 + $0x68] sm:$0xff]  ;;  %v58_v51 = vld [vmem:[%s1553_s1 + $0x70] sm:$0xff] }
  0x12   :  { %933 = vmatmul.mubr.msk.f32.vlgmr.msra.gmra.mxu0 %vm72_vm1, %v45_v18  ;;  %988 = vmatprep.subr.mxu0 %v533_v19  ;;  %v525_v49 = vld [vmem:[%s1554_s5 + $0x38] sm:$0xff]  ;;  %v524_v52 = vld [vmem:[%s1554_s5 + $0x30] sm:$0xff]  ;;  %v523_v54 = vld [vmem:[%s1554_s5 + $0x28] sm:$0xff] }
  0x13   :  { %935 = vmatprep.mubr.msk.f32.mxu0 %vm72_vm1, %v46_v20  ;;  %989 = vmatpush3.msra.mxu0 %v533_v19  ;;  %v59_v53 = vld [vmem:[%s1553_s1 + $0x78] sm:$0xff]  ;;  %v522_v55 = vld [vmem:[%s1554_s5 + $0x20] sm:$0xff]  ;;  %v520_v57 = vld [vmem:[%s1554_s5 + $0x10] sm:$0xff] }
  0x14   :  { %971 = vmatmul.mubr.msk.f32.gmra.mxu1 %vm266_vm0, %v33_v21  ;;  %990 = vmatprep.subr.mxu0 %v532_v22  ;;  %v521_v56 = vld [vmem:[%s1554_s5 + $0x18] sm:$0xff]  ;;  %v519_v58 = vld [vmem:[%s1554_s5 + $0x8] sm:$0xff]  ;;  %v518_v59 = vld [vmem:[%s1554_s5] sm:$0xff]  ;;  %s1077_s5 = smov 64  }
  0x15   :  { %973 = vmatprep.mubr.msk.f32.mxu1 %vm266_vm0, %v34_v23  ;;  %991 = vmatpush3.msra.mxu0 %v532_v22  ;;  %v1350_v1 = vld [vmem:[%s1555_s4] ss:$0 sm:$0xff] }
  0x16   :  { %936 = vmatmul.mubr.msk.f32.gmra.mxu0 %vm72_vm1, %v47_v24  ;;  %992 = vmatprep.subr.mxu0 %v531_v25 }
  0x17   :  { %938 = vmatprep.mubr.msk.f32.mxu0 %vm72_vm1, %v48_v26  ;;  %993 = vmatpush3.msra.mxu0 %v531_v25 }
  0x18   :  { %974 = vmatmul.mubr.msk.f32.gmra.mxu1 %vm266_vm0, %v35_v27  ;;  %994 = vmatprep.subr.mxu0 %v1220_v28 }
  0x19   :  { %976 = vmatprep.mubr.msk.f32.mxu1 %vm266_vm0, %v36_v29  ;;  %995 = vmatpush3.msra.mxu0 %v1220_v28 }
  0x1a   :  { %939 = vmatmul.mubr.msk.f32.gmra.mxu0 %vm72_vm1, %v49_v30  ;;  %996 = vmatprep.subr.mxu0 %v1233_v31 }
  0x1b   :  { %941 = vmatprep.mubr.msk.f32.mxu0 %vm72_vm1, %v50_v32  ;;  %997 = vmatpush3.msra.mxu0 %v1233_v31 }
  0x1c   :  { %977 = vmatmul.mubr.msk.f32.gmra.mxu1 %vm266_vm0, %v37_v33  ;;  %998 = vmatprep.subr.mxu0 %v528_v34 }
  0x1d   :  { %979 = vmatprep.mubr.msk.f32.mxu1 %vm266_vm0, %v38_v35  ;;  %1060 = vmatpush3.msra.mxu1 %v533_v19 }
  0x1e   :  { %942 = vmatmul.mubr.msk.f32.gmra.mxu0 %vm72_vm1, %v51_v36  ;;  %1045 = vmatprep.subr.mxu1 %v532_v22 }
  0x1f   :  { %944 = vmatprep.mubr.msk.f32.mxu0 %vm72_vm1, %v52_v37  ;;  %999 = vmatpush3.msra.mxu0 %v528_v34 }
  0x20   :  { %980 = vmatmul.mubr.msk.f32.gmra.mxu1 %vm266_vm0, %v39_v38  ;;  %1000 = vmatprep.subr.mxu0 %v527_v39 }
  0x21   :  { %982 = vmatprep.mubr.msk.f32.mxu1 %vm266_vm0, %v40_v40  ;;  %1061 = vmatpush3.msra.mxu1 %v532_v22 }
  0x22   :  { %945 = vmatmul.mubr.msk.f32.gmra.mxu0 %vm72_vm1, %v53_v41  ;;  %1046 = vmatprep.subr.mxu1 %v531_v25 }
  0x23   :  { %947 = vmatprep.mubr.msk.f32.mxu0 %vm72_vm1, %v54_v42  ;;  %1001 = vmatpush3.msra.mxu0 %v527_v39 }
  0x24   :  { %983 = vmatmul.mubr.msk.f32.gmra.mxu1 %vm266_vm0, %v41_v43  ;;  %1002 = vmatprep.subr.mxu0 %v526_v44 }
  0x25   :  { %985 = vmatprep.mubr.msk.f32.mxu1 %vm266_vm0, %v42_v45  ;;  %1062 = vmatpush3.msra.mxu1 %v531_v25 }
  0x26   :  { %948 = vmatmul.mubr.msk.f32.gmra.mxu0 %vm72_vm1, %v55_v46  ;;  %1047 = vmatprep.subr.mxu1 %v1220_v28 }
  0x27   :  { %950 = vmatprep.mubr.msk.f32.mxu0 %vm72_vm1, %v56_v47  ;;  %1003 = vmatpush3.msra.mxu0 %v526_v44 }
  0x28   :  { %986 = vmatmul.mubr.msk.f32.gmra.mxu1 %vm266_vm0, %v43_v48  ;;  %1004 = vmatprep.subr.mxu0 %v525_v49 }
  0x29   :  { %1005 = vmatpush3.msra.mxu0 %v525_v49  ;;  %1063 = vmatpush3.msra.mxu1 %v1220_v28 }
  0x2a   :  { %951 = vmatmul.mubr.msk.f32.gmra.mxu0 %vm72_vm1, %v57_v50  ;;  %1006 = vmatprep.subr.mxu0 %v524_v52 }
  0x2b   :  { %953 = vmatprep.mubr.msk.f32.mxu0 %vm72_vm1, %v58_v51  ;;  %1048 = vmatprep.subr.mxu1 %v1233_v31 }
  0x2c   :  { %1007 = vmatpush3.msra.mxu0 %v524_v52  ;;  %1064 = vmatpush3.msra.mxu1 %v1233_v31 }
  0x2d   :  { %1049 = vmatprep.subr.mxu1 %v528_v34  ;;  %1008 = vmatprep.subr.mxu0 %v523_v54 }
  0x2e   :  { %954 = vmatmul.mubr.msk.f32.gmra.mxu0 %vm72_vm1, %v59_v53  ;;  %1065 = vmatpush3.msra.mxu1 %v528_v34 }
  0x2f   :  { %1050 = vmatprep.subr.mxu1 %v527_v39  ;;  %1009 = vmatpush3.msra.mxu0 %v523_v54 }
  0x30   :  { %1066 = vmatpush3.msra.mxu1 %v527_v39  ;;  %1010 = vmatprep.subr.mxu0 %v522_v55 }
  0x31   :  { %1051 = vmatprep.subr.mxu1 %v526_v44  ;;  %1011 = vmatpush3.msra.mxu0 %v522_v55 }
  0x32   :  { %1067 = vmatpush3.msra.mxu1 %v526_v44  ;;  %1012 = vmatprep.subr.mxu0 %v521_v56 }
  0x33   :  { %1052 = vmatprep.subr.mxu1 %v525_v49  ;;  %1013 = vmatpush3.msra.mxu0 %v521_v56 }
  0x34   :  { %1068 = vmatpush3.msra.mxu1 %v525_v49  ;;  %1014 = vmatprep.subr.mxu0 %v520_v57 }
  0x35   :  { %1053 = vmatprep.subr.mxu1 %v524_v52  ;;  %1015 = vmatpush3.msra.mxu0 %v520_v57 }
  0x36   :  { %1069 = vmatpush3.msra.mxu1 %v524_v52  ;;  %1016 = vmatprep.subr.mxu0 %v519_v58 }
  0x37   :  { %1054 = vmatprep.subr.mxu1 %v523_v54  ;;  %1017 = vmatpush3.msra.mxu0 %v519_v58 }
  0x38   :  { %1070 = vmatpush3.msra.mxu1 %v523_v54  ;;  %1018 = vmatprep.subr.mxu0 %v518_v59 }
  0x39   :  { %1055 = vmatprep.subr.mxu1 %v522_v55  ;;  %1019 = vmatpush3.msra.mxu0 %v518_v59 }
  0x3a   :  { %1071 = vmatpush3.msra.mxu1 %v522_v55 }
  0x3b   :  { %1056 = vmatprep.subr.mxu1 %v521_v56 }
  0x3c   :  { %1072 = vmatpush3.msra.mxu1 %v521_v56 }
  0x3d   :  { %1057 = vmatprep.subr.mxu1 %v520_v57 }
  0x3e   :  { %1073 = vmatpush3.msra.mxu1 %v520_v57 }
  0x3f   :  { %1058 = vmatprep.subr.mxu1 %v519_v58 }
  0x40   :  { %1074 = vmatpush3.msra.mxu1 %v519_v58 }
  0x41   :  { %1059 = vmatprep.subr.mxu1 %v518_v59 }
  0x42   :  { %1075 = vmatpush3.msra.mxu1 %v518_v59 }
  0xcc   :  { %v966_v60 = vpop.f32.mrf.mxu1 }
  0xce   :  { %v381_v61 = vpop.f32.mrf.mxu1 }
  0xd0   :  { %v969_v62 = vpop.f32.mrf.mxu1 }
  0xd2   :  { %v934_v0 = vpop.f32.mrf.mxu0  ;;  %v391_v2 = vpop.f32.mrf.mxu1 }
  0xd3   :  { %v387_v3 = vadd.f32 %v966_v60, %v934_v0 }
  0xd4   :  { %v187_v4 = vpop.f32.mrf.mxu0  ;;  %v972_v5 = vpop.f32.mrf.mxu1 }
  0xd5   :  { %v468_v6 = vadd.f32 %v1350_v1, %v387_v3  ;;  %v382_v7 = vadd.f32 %v381_v61, %v187_v4 }
  0xd6   :  { %v937_v9 = vpop.f32.mrf.mxu0  ;;  %v401_v10 = vpop.f32.mrf.mxu1 }
  0xd7   :  { %v467_v11 = vadd.f32 %v1350_v1, %v382_v7  ;;  %v397_v12 = vadd.f32 %v969_v62, %v937_v9  ;;  %736 = vrot.lane.b32.xlu0 %v468_v6, %s1077_s5  ;;  %v487_v13 = vmax.f32 %v468_v6, 0.0 }
  0xd8   :  { %v197_v14 = vpop.f32.mrf.mxu0  ;;  %v975_v15 = vpop.f32.mrf.mxu1 }
  0xd9   :  { %v470_v16 = vadd.f32 %v1350_v1, %v397_v12  ;;  %v392_v17 = vadd.f32 %v391_v2, %v197_v14  ;;  %v486_v18 = vmax.f32 %v467_v11, 0.0  ;;  %v503_v25 = vsel %vm485_vm2, %v487_v13, %v468_v6 }
  0xda   :  { %v940_v19 = vpop.f32.mrf.mxu0  ;;  %v411_v20 = vpop.f32.mrf.mxu1 }
  0xdb   :  { %v469_v21 = vadd.f32 %v1350_v1, %v392_v17  ;;  %v407_v22 = vadd.f32 %v972_v5, %v940_v19  ;;  %740 = vrot.lane.b32.xlu1 %v470_v16, %s1077_s5  ;;  %734 = vrot.lane.b32.xlu0 %v467_v11, %s1077_s5  ;;  %v502_v23 = vsel %vm485_vm2, %v486_v18, %v467_v11  ;;  %v489_v27 = vmax.f32 %v470_v16, 0.0 }
  0xdc   :  { %v207_v24 = vpop.f32.mrf.mxu0  ;;  %1020 = vmatprep.mubr.f32.mxu0 %v502_v23  ;;  %v978_v26 = vpop.f32.mrf.mxu1 }
  0xdd   :  { %v472_v28 = vadd.f32 %v1350_v1, %v407_v22  ;;  %v402_v29 = vadd.f32 %v401_v10, %v207_v24  ;;  %1021 = vmatmul.mubr.f32.vlgmr.msra.gmra.mxu0 %v503_v25  ;;  %v488_v30 = vmax.f32 %v469_v21, 0.0  ;;  %v505_v37 = vsel %vm485_vm2, %v489_v27, %v470_v16 }
  0xde   :  { %v943_v31 = vpop.f32.mrf.mxu0  ;;  %v421_v32 = vpop.f32.mrf.mxu1 }
  0xdf   :  { %v471_v33 = vadd.f32 %v1350_v1, %v402_v29  ;;  %v417_v34 = vadd.f32 %v975_v15, %v943_v31  ;;  %738 = vrot.lane.b32.xlu1 %v469_v21, %s1077_s5  ;;  %v504_v35 = vsel %vm485_vm2, %v488_v30, %v469_v21  ;;  %v491_v39 = vmax.f32 %v472_v28, 0.0 }
  0xe0   :  { %v217_v36 = vpop.f32.mrf.mxu0  ;;  %1023 = vmatprep.mubr.f32.mxu0 %v504_v35  ;;  %v981_v38 = vpop.f32.mrf.mxu1 }
  0xe1   :  { %v474_v40 = vadd.f32 %v1350_v1, %v417_v34  ;;  %v412_v41 = vadd.f32 %v411_v20, %v217_v36  ;;  %742 = vrot.lane.b32.xlu0 %v471_v33, %s1077_s5  ;;  %1024 = vmatmul.mubr.f32.gmra.mxu0 %v505_v37  ;;  %v490_v42 = vmax.f32 %v471_v33, 0.0  ;;  %v507_v50 = vsel %vm485_vm2, %v491_v39, %v472_v28 }
  0xe2   :  { %v946_v43 = vpop.f32.mrf.mxu0  ;;  %v431_v44 = vpop.f32.mrf.mxu1 }
  0xe3   :  { %v473_v45 = vadd.f32 %v1350_v1, %v412_v41  ;;  %v427_v46 = vadd.f32 %v978_v26, %v946_v43  ;;  %744 = vrot.lane.b32.xlu1 %v472_v28, %s1077_s5  ;;  %v506_v47 = vsel %vm485_vm2, %v490_v42, %v471_v33  ;;  %v493_v48 = vmax.f32 %v474_v40, 0.0 }
  0xe4   :  { %v227_v49 = vpop.f32.mrf.mxu0  ;;  %1026 = vmatprep.mubr.f32.mxu0 %v506_v47  ;;  %v984_v51 = vpop.f32.mrf.mxu1  ;;  %v839_v47 = vld [vmem:[%s1557_s6] ss:$0 sm:$0xff] }
  0xe5   :  { %v476_v52 = vadd.f32 %v1350_v1, %v427_v46  ;;  %v422_v53 = vadd.f32 %v421_v32, %v227_v49  ;;  %746 = vrot.lane.b32.xlu0 %v473_v45, %s1077_s5  ;;  %1027 = vmatmul.mubr.f32.gmra.mxu0 %v507_v50  ;;  %v492_v54 = vmax.f32 %v473_v45, 0.0  ;;  %v509_v60 = vsel %vm485_vm2, %v493_v48, %v474_v40 }
  0xe6   :  { %v949_v55 = vpop.f32.mrf.mxu0  ;;  %v441_v61 = vpop.f32.mrf.mxu1 }
  0xe7   :  { %v475_v56 = vadd.f32 %v1350_v1, %v422_v53  ;;  %v437_v57 = vadd.f32 %v981_v38, %v949_v55  ;;  %748 = vrot.lane.b32.xlu1 %v474_v40, %s1077_s5  ;;  %v508_v58 = vsel %vm485_vm2, %v492_v54, %v473_v45  ;;  %v495_v62 = vmax.f32 %v476_v52, 0.0 }
  0xe8   :  { %v237_v59 = vpop.f32.mrf.mxu0  ;;  %1029 = vmatprep.mubr.f32.mxu1 %v508_v58  ;;  %v987_v9 = vpop.f32.mrf.mxu1 }
  0xe9   :  { %v478_v63 = vadd.f32 %v1350_v1, %v437_v57  ;;  %v432_v0 = vadd.f32 %v431_v44, %v237_v59  ;;  %1030 = vmatmul.mubr.f32.vlgmr.msra.gmra.mxu1 %v509_v60  ;;  %750 = vrot.lane.b32.xlu0 %v475_v56, %s1077_s5  ;;  %v494_v2 = vmax.f32 %v475_v56, 0.0  ;;  %v511_v10 = vsel %vm485_vm2, %v495_v62, %v476_v52 }
  0xea   :  { %v952_v3 = vpop.f32.mrf.mxu0  ;;  %v451_v19 = vpop.f32.mrf.mxu1 }
  0xeb   :  { %v477_v4 = vadd.f32 %v1350_v1, %v432_v0  ;;  %v447_v5 = vadd.f32 %v984_v51, %v952_v3  ;;  %752 = vrot.lane.b32.xlu1 %v476_v52, %s1077_s5  ;;  %v510_v6 = vsel %vm485_vm2, %v494_v2, %v475_v56  ;;  %v497_v11 = vmax.f32 %v478_v63, 0.0 }
  0xec   :  { %v247_v7 = vpop.f32.mrf.mxu0  ;;  %1032 = vmatprep.mubr.f32.mxu1 %v510_v6 }
  0xed   :  { %v480_v12 = vadd.f32 %v1350_v1, %v447_v5  ;;  %v442_v13 = vadd.f32 %v441_v61, %v247_v7  ;;  %1033 = vmatmul.mubr.f32.gmra.mxu1 %v511_v10  ;;  %754 = vrot.lane.b32.xlu0 %v477_v4, %s1077_s5  ;;  %v496_v14 = vmax.f32 %v477_v4, 0.0  ;;  %v513_v21 = vsel %vm485_vm2, %v497_v11, %v478_v63 }
  0xee   :  { %v955_v15 = vpop.f32.mrf.mxu0 }
  0xef   :  { %v479_v16 = vadd.f32 %v1350_v1, %v442_v13  ;;  %v457_v17 = vadd.f32 %v987_v9, %v955_v15  ;;  %756 = vrot.lane.b32.xlu1 %v478_v63, %s1077_s5  ;;  %v512_v18 = vsel %vm485_vm2, %v496_v14, %v477_v4  ;;  %v499_v22 = vmax.f32 %v480_v12, 0.0 }
  0xf0   :  { %v257_v20 = vpop.f32.mrf.mxu0  ;;  %1035 = vmatprep.mubr.f32.mxu1 %v512_v18 }
  0xf1   :  { %v482_v23 = vadd.f32 %v1350_v1, %v457_v17  ;;  %v452_v24 = vadd.f32 %v451_v19, %v257_v20  ;;  %1036 = vmatmul.mubr.f32.gmra.mxu1 %v513_v21  ;;  %758 = vrot.lane.b32.xlu0 %v479_v16, %s1077_s5  ;;  %v498_v25 = vmax.f32 %v479_v16, 0.0  ;;  %v515_v28 = vsel %vm485_vm2, %v499_v22, %v480_v12 }
  0xf3   :  { %v481_v26 = vadd.f32 %v1350_v1, %v452_v24  ;;  %760 = vrot.lane.b32.xlu1 %v480_v12, %s1077_s5  ;;  %v514_v27 = vsel %vm485_vm2, %v498_v25, %v479_v16  ;;  %v501_v29 = vmax.f32 %v482_v23, 0.0 }
  0xf4   :  { %1038 = vmatprep.mubr.f32.mxu1 %v514_v27 }
  0xf5   :  { %1039 = vmatmul.mubr.f32.gmra.mxu1 %v515_v28  ;;  %762 = vrot.lane.b32.xlu0 %v481_v26, %s1077_s5  ;;  %v500_v30 = vmax.f32 %v481_v26, 0.0  ;;  %v517_v1 = vsel %vm485_vm2, %v501_v29, %v482_v23 }
  0xf7   :  { %764 = vrot.lane.b32.xlu1 %v482_v23, %s1077_s5  ;;  %v516_v31 = vsel %vm485_vm2, %v500_v30, %v481_v26 }
  0xf8   :  { %1041 = vmatprep.mubr.f32.mxu1 %v516_v31 }
  0xf9   :  { %1042 = vmatmul.mubr.f32.gmra.mxu1 %v517_v1 }
 0x149   :  { %v737_v32 = vpop.permute.xlu0 %736 }
 0x14a   :  { %783 = vst.msk [vmem:[%s1556_s8 + $0x8] sm:$0xff] %vm72_vm1, %v737_v32 }
 0x14d   :  { %v741_v33 = vpop.permute.xlu1 %740  ;;  %v735_v34 = vpop.permute.xlu0 %734 }
 0x14e   :  { %785 = vst.msk [vmem:[%s1556_s8 + $0x18] sm:$0xff] %vm72_vm1, %v741_v33  ;;  %782 = vst.msk [vmem:[%s1556_s8] sm:$0xff] %vm72_vm1, %v735_v34 }
 0x151   :  { %v739_v8 = vpop.permute.xlu1 %738 }
 0x152   :  { %784 = vst.msk [vmem:[%s1556_s8 + $0x10] sm:$0xff] %vm72_vm1, %v739_v8 }
 0x153   :  { %v743_v35 = vpop.permute.xlu0 %742 }
 0x154   :  { %786 = vst.msk [vmem:[%s1556_s8 + $0x20] sm:$0xff] %vm72_vm1, %v743_v35 }
 0x155   :  { %v745_v36 = vpop.permute.xlu1 %744 }
 0x156   :  { %787 = vst.msk [vmem:[%s1556_s8 + $0x28] sm:$0xff] %vm72_vm1, %v745_v36 }
 0x157   :  { %v747_v37 = vpop.permute.xlu0 %746 }
 0x158   :  { %788 = vst.msk [vmem:[%s1556_s8 + $0x30] sm:$0xff] %vm72_vm1, %v747_v37 }
 0x159   :  { %v749_v38 = vpop.permute.xlu1 %748 }
 0x15a   :  { %789 = vst.msk [vmem:[%s1556_s8 + $0x38] sm:$0xff] %vm72_vm1, %v749_v38 }
 0x15b   :  { %v751_v39 = vpop.permute.xlu0 %750 }
 0x15c   :  { %790 = vst.msk [vmem:[%s1556_s8 + $0x40] sm:$0xff] %vm72_vm1, %v751_v39 }
 0x15d   :  { %v753_v40 = vpop.permute.xlu1 %752 }
 0x15e   :  { %791 = vst.msk [vmem:[%s1556_s8 + $0x48] sm:$0xff] %vm72_vm1, %v753_v40 }
 0x15f   :  { %v755_v41 = vpop.permute.xlu0 %754 }
 0x160   :  { %792 = vst.msk [vmem:[%s1556_s8 + $0x50] sm:$0xff] %vm72_vm1, %v755_v41 }
 0x161   :  { %v757_v42 = vpop.permute.xlu1 %756 }
 0x162   :  { %793 = vst.msk [vmem:[%s1556_s8 + $0x58] sm:$0xff] %vm72_vm1, %v757_v42 }
 0x163   :  { %v759_v43 = vpop.permute.xlu0 %758 }
 0x164   :  { %794 = vst.msk [vmem:[%s1556_s8 + $0x60] sm:$0xff] %vm72_vm1, %v759_v43 }
 0x165   :  { %v761_v44 = vpop.permute.xlu1 %760 }
 0x166   :  { %795 = vst.msk [vmem:[%s1556_s8 + $0x68] sm:$0xff] %vm72_vm1, %v761_v44 }
 0x167   :  { %v763_v45 = vpop.permute.xlu0 %762 }
 0x168   :  { %796 = vst.msk [vmem:[%s1556_s8 + $0x70] sm:$0xff] %vm72_vm1, %v763_v45 }
 0x169   :  { %v765_v46 = vpop.permute.xlu1 %764 }
 0x16a   :  { %797 = vst.msk [vmem:[%s1556_s8 + $0x78] sm:$0xff] %vm72_vm1, %v765_v46 }
 0x19d   :  { %v1022_v48 = vpop.f32.mrf.mxu0 }
 0x19e   :  { %v613_v49 = vadd.f32 %v1022_v48, %v839_v47 }
 0x19f   :  { %v607_v50 = vpop.f32.mrf.mxu0 }
 0x1a0   :  { %v687_v51 = vmax.f32 %v613_v49, 0.0  ;;  %v608_v52 = vadd.f32 %v839_v47, %v607_v50 }
 0x1a1   :  { %v1025_v53 = vpop.f32.mrf.mxu0 }
 0x1a2   :  { %703 = vst.msk [vmem:[%s1558_s7 + $0x8] sm:$0xff] %vm72_vm1, %v687_v51  ;;  %v686_v54 = vmax.f32 %v608_v52, 0.0  ;;  %v623_v55 = vadd.f32 %v1025_v53, %v839_v47 }
 0x1a3   :  { %v617_v56 = vpop.f32.mrf.mxu0 }
 0x1a4   :  { %702 = vst.msk [vmem:[%s1558_s7] sm:$0xff] %vm72_vm1, %v686_v54  ;;  %v689_v57 = vmax.f32 %v623_v55, 0.0  ;;  %v618_v58 = vadd.f32 %v839_v47, %v617_v56 }
 0x1a5   :  { %v1028_v59 = vpop.f32.mrf.mxu0 }
 0x1a6   :  { %705 = vst.msk [vmem:[%s1558_s7 + $0x18] sm:$0xff] %vm72_vm1, %v689_v57  ;;  %v688_v60 = vmax.f32 %v618_v58, 0.0  ;;  %v633_v61 = vadd.f32 %v1028_v59, %v839_v47 }
 0x1a7   :  { %v627_v62 = vpop.f32.mrf.mxu0 }
 0x1a8   :  { %704 = vst.msk [vmem:[%s1558_s7 + $0x10] sm:$0xff] %vm72_vm1, %v688_v60  ;;  %v691_v63 = vmax.f32 %v633_v61, 0.0  ;;  %v628_v0 = vadd.f32 %v839_v47, %v627_v62 }
 0x1a9   :  { %v1031_v2 = vpop.f32.mrf.mxu1 }
 0x1aa   :  { %707 = vst.msk [vmem:[%s1558_s7 + $0x28] sm:$0xff] %vm72_vm1, %v691_v63  ;;  %v690_v3 = vmax.f32 %v628_v0, 0.0  ;;  %v643_v4 = vadd.f32 %v1031_v2, %v839_v47 }
 0x1ab   :  { %v637_v5 = vpop.f32.mrf.mxu1 }
 0x1ac   :  { %706 = vst.msk [vmem:[%s1558_s7 + $0x20] sm:$0xff] %vm72_vm1, %v690_v3  ;;  %v693_v6 = vmax.f32 %v643_v4, 0.0  ;;  %v638_v7 = vadd.f32 %v839_v47, %v637_v5 }
 0x1ad   :  { %v1034_v9 = vpop.f32.mrf.mxu1 }
 0x1ae   :  { %709 = vst.msk [vmem:[%s1558_s7 + $0x38] sm:$0xff] %vm72_vm1, %v693_v6  ;;  %v692_v10 = vmax.f32 %v638_v7, 0.0  ;;  %v653_v11 = vadd.f32 %v1034_v9, %v839_v47 }
 0x1af   :  { %v647_v12 = vpop.f32.mrf.mxu1 }
 0x1b0   :  { %708 = vst.msk [vmem:[%s1558_s7 + $0x30] sm:$0xff] %vm72_vm1, %v692_v10  ;;  %v695_v13 = vmax.f32 %v653_v11, 0.0  ;;  %v648_v14 = vadd.f32 %v839_v47, %v647_v12 }
 0x1b1   :  { %v1037_v15 = vpop.f32.mrf.mxu1 }
 0x1b2   :  { %711 = vst.msk [vmem:[%s1558_s7 + $0x48] sm:$0xff] %vm72_vm1, %v695_v13  ;;  %v694_v16 = vmax.f32 %v648_v14, 0.0  ;;  %v663_v17 = vadd.f32 %v1037_v15, %v839_v47 }
 0x1b3   :  { %v657_v18 = vpop.f32.mrf.mxu1 }
 0x1b4   :  { %710 = vst.msk [vmem:[%s1558_s7 + $0x40] sm:$0xff] %vm72_vm1, %v694_v16  ;;  %v697_v19 = vmax.f32 %v663_v17, 0.0  ;;  %v658_v20 = vadd.f32 %v839_v47, %v657_v18 }
 0x1b5   :  { %v1040_v21 = vpop.f32.mrf.mxu1 }
 0x1b6   :  { %713 = vst.msk [vmem:[%s1558_s7 + $0x58] sm:$0xff] %vm72_vm1, %v697_v19  ;;  %v696_v22 = vmax.f32 %v658_v20, 0.0  ;;  %v673_v23 = vadd.f32 %v1040_v21, %v839_v47 }
 0x1b7   :  { %v667_v24 = vpop.f32.mrf.mxu1 }
 0x1b8   :  { %712 = vst.msk [vmem:[%s1558_s7 + $0x50] sm:$0xff] %vm72_vm1, %v696_v22  ;;  %v699_v25 = vmax.f32 %v673_v23, 0.0  ;;  %v668_v26 = vadd.f32 %v839_v47, %v667_v24 }
 0x1b9   :  { %v1043_v27 = vpop.f32.mrf.mxu1 }
 0x1ba   :  { %715 = vst.msk [vmem:[%s1558_s7 + $0x68] sm:$0xff] %vm72_vm1, %v699_v25  ;;  %v698_v28 = vmax.f32 %v668_v26, 0.0  ;;  %v683_v29 = vadd.f32 %v1043_v27, %v839_v47 }
 0x1bb   :  { %v677_v30 = vpop.f32.mrf.mxu1 }
 0x1bc   :  { %714 = vst.msk [vmem:[%s1558_s7 + $0x60] sm:$0xff] %vm72_vm1, %v698_v28  ;;  %v701_v31 = vmax.f32 %v683_v29, 0.0  ;;  %v678_v1 = vadd.f32 %v839_v47, %v677_v30 }
 0x1be   :  { %717 = vst.msk [vmem:[%s1558_s7 + $0x78] sm:$0xff] %vm72_vm1, %v701_v31  ;;  %v700_v32 = vmax.f32 %v678_v1, 0.0 }
 0x1c0   :  { %716 = vst.msk [vmem:[%s1558_s7 + $0x70] sm:$0xff] %vm72_vm1, %v700_v32 }

</bundles_post_ra>
